<compile_context>
chip_gen: v7x
topology: tpu7x:2x2x1
jax: 0.10.0
libtpu: 0.0.40
codegen_flags: <defaults>
</compile_context>

<pallas_src>
import functools

import jax
import jax.numpy as jnp
from jax import lax
from jax.experimental import pallas as pl
from jax.experimental.pallas import tpu as pltpu


_SQRT_HALF = 0.7071067811865476
_SQRT_2_OVER_PI = 0.7978845608028654


def _gelu(x, approximate):
    if approximate:
        # tanh runs on the EUP (own VLIW slot -> overlaps MXU/VPU work).
        return 0.5 * x * (1.0 + jnp.tanh(_SQRT_2_OVER_PI * (x + 0.044715 * x * x * x)))
    # Exact erf-based GELU, matching torch.nn.GELU() default.
    return 0.5 * x * (1.0 + lax.erf(x * _SQRT_HALF))


def _round_up(n, m):
    return ((n + m - 1) // m) * m


def _mlp_kernel(x_ref, w1_ref, b1_ref, w2_ref, b2_ref, o_ref, *, approx_gelu):
    # x_ref:(tm,H) bf16   w1_ref:(H,H) bf16   b1_ref:(1,H) f32
    # w2_ref:(H,Cp) bf16  b2_ref:(1,Cp) f32   o_ref:(tm,Cp) f32
    h = jnp.dot(x_ref[...], w1_ref[...], preferred_element_type=jnp.float32)
    h = _gelu(h + b1_ref[...], approx_gelu)  # bias + GELU in f32 (safe on v5e)
    y = jnp.dot(h.astype(jnp.bfloat16), w2_ref[...],
                preferred_element_type=jnp.float32) + b2_ref[...]
    o_ref[...] = y.astype(o_ref.dtype)


def _pick_tm(n_rows, hidden_dim, tm=None):
    """Row tile: multiple of 128, aims for >=4 grid steps, <=1024 rows,
    and keeps the f32 intermediate (tm x H) around <=2 MiB."""
    if tm is None:
        tm = _round_up(max(n_rows // 4, 1), 128)
    tm = _round_up(max(tm, 128), 128)
    tm = min(tm, 1024)
    interm_cap = max(128, ((2 << 20) // max(4 * hidden_dim, 1)) // 128 * 128)
    tm = min(tm, interm_cap)
    tm = min(tm, _round_up(n_rows, 128))
    return tm


def tensor_group_head_forward(x_list, params, *, tm=None, approx_gelu=False):
    """Forward of TensorGroupHead with groups=None.

    x_list: list of [Ni, H] arrays.  Returns list of [Ni, C] arrays.
    """
    lengths = [int(t.shape[0]) for t in x_list]
    N = sum(lengths)
    H = int(x_list[0].shape[1])
    C = int(params["w2"].shape[1])
    out_dtype = x_list[0].dtype

    tm = _pick_tm(N, H, tm)
    Np = _round_up(N, tm)
    Cp = _round_up(max(C, 128), 128)  # lane-dense output (unmasked vst)

    # --- single fused HBM pass over the activations: concat + bf16 + row pad.
    pieces = [t.astype(jnp.bfloat16) for t in x_list]
    if Np > N:
        pieces.append(jnp.zeros((Np - N, H), jnp.bfloat16))
    x_p = jnp.concatenate(pieces, axis=0)  # (Np, H) bf16

    # --- weights: cast / pad once in the wrapper (constant index_map blocks).
    w1_p = params["w1"].astype(jnp.bfloat16)                       # (H, H)
    b1_p = params["b1"].reshape(1, H).astype(jnp.float32)          # (1, H)
    w2_p = jnp.pad(params["w2"], ((0, 0), (0, Cp - C))).astype(jnp.bfloat16)
    b2_p = jnp.pad(params["b2"].reshape(1, C),
                   ((0, 0), (0, Cp - C))).astype(jnp.float32)      # (1, Cp)

    grid = (Np // tm,)
    resident = pl.Buffered(1)  # constant-index blocks: no double buffering

    in_specs = [
        pl.BlockSpec((tm, H), lambda i: (i, 0)),                               # x tile
        pl.BlockSpec((H, H), lambda i: (0, 0), pipeline_mode=resident),        # W1
        pl.BlockSpec((1, H), lambda i: (0, 0), pipeline_mode=resident),        # b1
        pl.BlockSpec((H, Cp), lambda i: (0, 0), pipeline_mode=resident),       # W2
        pl.BlockSpec((1, Cp), lambda i: (0, 0), pipeline_mode=resident),       # b2
    ]
    out_spec = pl.BlockSpec((tm, Cp), lambda i: (i, 0))

    # VMEM estimate: double-buffered x/out tiles + single-buffered bf16
    # weights + f32 intermediate, +20% headroom, clamped below physical VMEM.
    vmem_est = (
        2 * tm * H * 2          # x tiles (bf16, double buffered)
        + 2 * tm * Cp * 4       # out tiles (f32, double buffered)
        + (H * H + H * Cp) * 2  # weights (bf16, single buffered)
        + (H + Cp) * 4          # biases (f32, single buffered)
        + tm * H * 4            # f32 intermediate h
    )
    try:
        vmem_cap = pltpu.get_tpu_info().vmem_capacity_bytes
    except Exception:  # pragma: no cover - conservative fallback (v7x size)
        vmem_cap = 64 << 20
    vmem_limit = int(min(max(int(vmem_est * 1.2) + (4 << 20), 16 << 20),
                         int(0.85 * vmem_cap)))

    cost = pl.CostEstimate(
        flops=2 * Np * H * (H + Cp),
        transcendentals=Np * H,  # advisory; erf lowers to a VALU polynomial
        bytes_accessed=(Np * H * 2 + (H * H + H * Cp) * 2
                        + (H + Cp) * 4 + Np * Cp * 4),
    )

    out_p = pl.pallas_call(
        functools.partial(_mlp_kernel, approx_gelu=approx_gelu),
        out_shape=jax.ShapeDtypeStruct((Np, Cp), out_dtype),
        grid_spec=pltpu.PrefetchScalarGridSpec(
            num_scalar_prefetch=0,
            grid=grid,
            in_specs=in_specs,
            out_specs=out_spec,
        ),
        compiler_params=pltpu.CompilerParams(
            dimension_semantics=("parallel",),
            vmem_limit_bytes=vmem_limit,
        ),
        cost_estimate=cost,
    )(x_p, w1_p, b1_p, w2_p, b2_p)

    out = out_p[:N, :C]
    splits, off = [], 0
    for n in lengths:
        splits.append(out[off:off + n])
        off += n
    return splits


def _init_params(key, hidden_dim, num_classes):
    # Deterministic synthetic init (roughly matches Linear's fan-in scaling).
    k1, k2, k3, k4 = jax.random.split(key, 4)
    s1 = 1.0 / jnp.sqrt(hidden_dim)
    w1 = jax.random.uniform(k1, (hidden_dim, hidden_dim), jnp.float32, -s1, s1)  # [in, out]
    b1 = jax.random.uniform(k2, (1, hidden_dim), jnp.float32, -s1, s1)
    w2 = jax.random.uniform(k3, (hidden_dim, num_classes), jnp.float32, -s1, s1)  # [in, out]
    b2 = jax.random.uniform(k4, (1, num_classes), jnp.float32, -s1, s1)
    return {"w1": w1, "b1": b1, "w2": w2, "b2": b2}


def _reference_forward(x_list, params, *, bf16_matmul, approx_gelu=False):
    """Pure-JAX reference; bf16_matmul=True mirrors the kernel's precision."""
    x_cat = jnp.concatenate(x_list, axis=0)
    w1, b1, w2, b2 = params["w1"], params["b1"], params["w2"], params["b2"]
    if bf16_matmul:
        h = jnp.dot(x_cat.astype(jnp.bfloat16), w1.astype(jnp.bfloat16),
                    preferred_element_type=jnp.float32) + b1
        h = _gelu(h, approx_gelu)
        y = jnp.dot(h.astype(jnp.bfloat16), w2.astype(jnp.bfloat16),
                    preferred_element_type=jnp.float32) + b2
    else:
        h = _gelu(x_cat @ w1 + b1, approx_gelu)
        y = h @ w2 + b2
    lengths = [int(t.shape[0]) for t in x_list]
    outs, off = [], 0
    for n in lengths:
        outs.append(y[off:off + n])
        off += n
    return outs


if __name__ == "__main__":
    hidden_dim = 32
    num_classes = 16

    key = jax.random.PRNGKey(0)
    kx1, kx2, kp = jax.random.split(key, 3)

    # Two grouped feature tensors (list input, as in the PyTorch module).
    # Total N = 512 -> tm=128, 4 grid steps (both v7x TensorCores pipelined).
    x_list = [
        jax.random.normal(kx1, (200, hidden_dim), jnp.float32),
        jax.random.normal(kx2, (312, hidden_dim), jnp.float32),
    ]
    params = _init_params(kp, hidden_dim, num_classes)

    outs = tensor_group_head_forward(x_list, params)
    outs = [jax.block_until_ready(o) for o in outs]

    # Check against a matching mixed-precision reference (tight) ...
    refs_mixed = _reference_forward(x_list, params, bf16_matmul=True)
    for o, r in zip(outs, refs_mixed):
        assert o.shape == r.shape
        assert jnp.max(jnp.abs(o - r)) < 1e-3, float(jnp.max(jnp.abs(o - r)))

    # ... and against the pure-f32 module semantics (loose, bf16 operand cast).
    refs_f32 = _reference_forward(x_list, params, bf16_matmul=False)
    for o, r in zip(outs, refs_f32):
        assert jnp.max(jnp.abs(o - r)) < 5e-2, float(jnp.max(jnp.abs(o - r)))

    print("KERNEL_OK")
</pallas_src>

<mosaic_0001>
module attributes {stable_mosaic.version = 11 : i64} {
  func.func @_mlp_kernel(%arg0: i32, %arg1: memref<128x32xbf16, #tpu.memory_space<vmem>>, %arg2: memref<32x32xbf16, #tpu.memory_space<vmem>>, %arg3: memref<1x32xf32, #tpu.memory_space<vmem>>, %arg4: memref<32x128xbf16, #tpu.memory_space<vmem>>, %arg5: memref<1x128xf32, #tpu.memory_space<vmem>>, %arg6: memref<128x128xf32, #tpu.memory_space<vmem>>) attributes {dimension_semantics = [#tpu.dimension_semantics<parallel>], iteration_bounds = array<i64: 4>, scalar_prefetch = 0 : i64, scratch_operands = 0 : i64, tpu.core_type = #tpu.core_type<tc>, window_params = [{transform_indices = @transform_0, window_bounds = array<i64: 128, 32>}, {pipeline_mode = #tpu.pipeline_mode<synchronous>, transform_indices = @transform_1, window_bounds = array<i64: 32, 32>}, {pipeline_mode = #tpu.pipeline_mode<synchronous>, transform_indices = @transform_2, window_bounds = array<i64: 1, 32>}, {pipeline_mode = #tpu.pipeline_mode<synchronous>, transform_indices = @transform_3, window_bounds = array<i64: 32, 128>}, {pipeline_mode = #tpu.pipeline_mode<synchronous>, transform_indices = @transform_4, window_bounds = array<i64: 1, 128>}, {transform_indices = @transform_5, window_bounds = array<i64: 128, 128>}]} {
    %c0 = arith.constant 0 : index
    %c0_0 = arith.constant 0 : index
    %0 = vector.load %arg1[%c0, %c0_0] : memref<128x32xbf16, #tpu.memory_space<vmem>>, vector<128x32xbf16>
    %c0_1 = arith.constant 0 : index
    %c0_2 = arith.constant 0 : index
    %1 = vector.load %arg2[%c0_1, %c0_2] : memref<32x32xbf16, #tpu.memory_space<vmem>>, vector<32x32xbf16>
    %cst = arith.constant dense<0.000000e+00> : vector<128x32xf32>
    %2 = tpu.matmul %0, %1, %cst {dimension_numbers = #tpu.dot_dimension_numbers<[1], [0], [0], [1], [0, 0, 1, 1], [], []>} : vector<128x32xbf16>, vector<32x32xbf16>, vector<128x32xf32> -> vector<128x32xf32>
    %c0_3 = arith.constant 0 : index
    %c0_4 = arith.constant 0 : index
    %3 = vector.load %arg3[%c0_3, %c0_4] : memref<1x32xf32, #tpu.memory_space<vmem>>, vector<1x32xf32>
    %4 = vector.broadcast %3 : vector<1x32xf32> to vector<128x32xf32>
    %5 = arith.addf %2, %4 : vector<128x32xf32>
    %cst_5 = arith.constant 5.000000e-01 : f32
    %6 = vector.broadcast %cst_5 : f32 to vector<128x32xf32>
    %7 = arith.mulf %6, %5 : vector<128x32xf32>
    %cst_6 = arith.constant 0.707106769 : f32
    %8 = vector.broadcast %cst_6 : f32 to vector<128x32xf32>
    %9 = arith.mulf %5, %8 : vector<128x32xf32>
    %10 = math.erf %9 : vector<128x32xf32>
    %cst_7 = arith.constant 1.000000e+00 : f32
    %11 = vector.broadcast %cst_7 : f32 to vector<128x32xf32>
    %12 = arith.addf %11, %10 : vector<128x32xf32>
    %13 = arith.mulf %7, %12 : vector<128x32xf32>
    %14 = arith.truncf %13 : vector<128x32xf32> to vector<128x32xbf16>
    %c0_8 = arith.constant 0 : index
    %c0_9 = arith.constant 0 : index
    %15 = vector.load %arg4[%c0_8, %c0_9] : memref<32x128xbf16, #tpu.memory_space<vmem>>, vector<32x128xbf16>
    %cst_10 = arith.constant dense<0.000000e+00> : vector<128x128xf32>
    %16 = tpu.matmul %14, %15, %cst_10 {dimension_numbers = #tpu.dot_dimension_numbers<[1], [0], [0], [1], [0, 0, 1, 1], [], []>} : vector<128x32xbf16>, vector<32x128xbf16>, vector<128x128xf32> -> vector<128x128xf32>
    %c0_11 = arith.constant 0 : index
    %c0_12 = arith.constant 0 : index
    %17 = vector.load %arg5[%c0_11, %c0_12] : memref<1x128xf32, #tpu.memory_space<vmem>>, vector<1x128xf32>
    %18 = vector.broadcast %17 : vector<1x128xf32> to vector<128x128xf32>
    %19 = arith.addf %16, %18 : vector<128x128xf32>
    %c0_13 = arith.constant 0 : index
    %c0_14 = arith.constant 0 : index
    %20 = vector.load %arg6[%c0_13, %c0_14] : memref<128x128xf32, #tpu.memory_space<vmem>>, vector<128x128xf32>
    tpu.vector_store %arg6[%c0_13, %c0_14], %19 {strides = array<i32>} : memref<128x128xf32, #tpu.memory_space<vmem>>, vector<128x128xf32>,
    return
  }
  func.func @transform_0(%arg0: i32) -> (i32, i32) {
    %c0_i32 = arith.constant 0 : i32
    %c0_i32_0 = arith.constant 0 : i32
    return %arg0, %c0_i32 : i32, i32
  }
  func.func @transform_1(%arg0: i32) -> (i32, i32) {
    %c0_i32 = arith.constant 0 : i32
    %c0_i32_0 = arith.constant 0 : i32
    %c0_i32_1 = arith.constant 0 : i32
    return %c0_i32, %c0_i32_0 : i32, i32
  }
  func.func @transform_2(%arg0: i32) -> (i32, i32) {
    %c0_i32 = arith.constant 0 : i32
    %c0_i32_0 = arith.constant 0 : i32
    %c0_i32_1 = arith.constant 0 : i32
    return %c0_i32, %c0_i32_0 : i32, i32
  }
  func.func @transform_3(%arg0: i32) -> (i32, i32) {
    %c0_i32 = arith.constant 0 : i32
    %c0_i32_0 = arith.constant 0 : i32
    %c0_i32_1 = arith.constant 0 : i32
    return %c0_i32, %c0_i32_0 : i32, i32
  }
  func.func @transform_4(%arg0: i32) -> (i32, i32) {
    %c0_i32 = arith.constant 0 : i32
    %c0_i32_0 = arith.constant 0 : i32
    %c0_i32_1 = arith.constant 0 : i32
    return %c0_i32, %c0_i32_0 : i32, i32
  }
  func.func @transform_5(%arg0: i32) -> (i32, i32) {
    %c0_i32 = arith.constant 0 : i32
    %c0_i32_0 = arith.constant 0 : i32
    return %arg0, %c0_i32 : i32, i32
  }
}

</mosaic_0001>

<bundles_post_ra>
// kernel: tpu_custom_call.1
= control target key start
LH: loop header
LB: loop body
LE: loop exit
PB: predicated region body
PF: predicated region fallthrough
CT: control target
= control target key end

     0   :  { %10 = vsyncpa [#allocation3], 0  ;;  %s1226_s0 = inlined_call_operand.vmem [shape: bf16[512,32], index: 0, kind: input, shape index: {}]   ;;  %s1227_s1 = inlined_call_operand.vmem [shape: bf16[32,32], index: 1, kind: input, shape index: {}]   ;;  %s1228_s2 = inlined_call_operand.vmem [shape: f32[1,32], index: 2, kind: input, shape index: {}]   ;;  %s1229_s3 = inlined_call_operand.vmem [shape: bf16[32,128], index: 3, kind: input, shape index: {}]   ;;  %s1230_s4 = inlined_call_operand.vmem [shape: f32[1,128], index: 4, kind: input, shape index: {}]   ;;  %s1231_s5 = inlined_call_operand.hbm [shape: f32[512,128], index: 5, kind: output, shape index: {}]  }
   0x1   :  { %12 = vsyncpa [#allocation3 + $0x1], 0  ;;  %s1037_s18 = smov 0   ;;  %s1039_s19 = smov 0  }
   0x2   :  { %s1041_s20 = smov 0   ;;  %s1043_s21 = smov 0  }
   0x3 LB: > { %s1058_s22 = sadd.s32 4294967295, %s1002_s21   ;;  %s752_s23 = sadd.s32 4294967294, %s1002_s21   ;;  %s1002_s21 = sphi %s1043_s21, %s1237_s21   ;;  %s998_s20 = sphi %s1041_s20, %s1236_s20   ;;  %s994_s19 = sphi %s1039_s19, %s1235_s19   ;;  %s990_s18 = sphi %s1037_s18, %s1234_s18  }
   0x4   : > { %s1062_s24 = sadd.s32 1, %s1002_s21   ;;  %s135_s25 = sadd.s32 1, %s998_s20 }
   0x5   : > { %s132_s26 = ssub.s32 %s1002_s21, %s1062_s24  ;;  %p145_p0 = scmp.ne.s32.totalorder %s998_s20, %s994_s19 }
   0x6   : > { %p133_p1 = scmp.eq.s32.totalorder %s132_s26, 0  ;;  %p146_p2 = scmp.eq.s32.totalorder %s1058_s22, 3 }
   0x7   : > { %p151_p3 = scmp.ne.s32.totalorder %s994_s19, %s990_s18  ;;  %p152_p4 = scmp.eq.s32.totalorder %s752_s23, 3 }
   0x8   : > { %s1073_s27 = scalar_select %p133_p1, %s998_s20, %s135_s25  }
   0x9   : > { %p1075_p5 = por %p146_p2, %p145_p0  ;;  %p1079_p6 = por %p152_p4, %p151_p3 }
   0xa   : > { %p755_p7 = scmp.ge.s32.totalorder %s1002_s21, 1  ;;  %p191_p8 = scmp.lt.s32.totalorder %s1002_s21, 5 }
   0xc   : > { %p192_p9 = pnand %p755_p7, %p191_p8 }
   0xd   : > { %v896_v0 = vld [vmem:[%s1227_s1] sm:$0xff] (!%p192_p9)   ;;  %s757_s7 = sshll.u32 (!%p192_p9), %s1058_s22, 4  ;;  %v897_v1 = vld [vmem:[%s1227_s1 + $0x8] sm:$0xff] (!%p192_p9)   ;;  %vm306_vm0 = vcmask (!%p192_p9), 261120   ;;  %s216_s26 = sand.u32 (!%p192_p9), 1, %s994_s19  }
   0xe   : > { %195 = sbr.rel (%p192_p9) target bundleno = 519 (0x207), region = 40  ;;  %p220_p10 = scmp.lt.s32.totalorder (!%p192_p9), %s757_s7, 63  ;;  %815 = vmatprep.subr.bf16.mxu0 (!%p192_p9), %v896_v0  ;;  %v906_v10 = vld [vmem:[%s1229_s3] sm:$0xff] (!%p192_p9)   ;;  %v907_v11 = vld [vmem:[%s1229_s3 + $0x8] sm:$0xff] (!%p192_p9)  }
   0xf   : > { %816 = vmatpush3.bf16.msra.mxu0 (!%p192_p9), %v896_v0  ;;  %835 = vmatprep.subr.bf16.mxu1 (!%p192_p9), %v906_v10  ;;  %v1112_v12 = vld [vmem:[%s1228_s2] ss:$0 sm:$0xff] (!%p192_p9)  ;;  %s756_s30 = sshll.u32 (!%p192_p9), %s216_s26, 7  ;;  %s794_s9 = sshll.u32 (!%p192_p9), %s1058_s22, 11 }
  0x10   : > { %817 = vmatprep.subr.bf16.mxu0 (!%p192_p9), %v897_v1  ;;  %836 = vmatpush3.bf16.msra.mxu1 (!%p192_p9), %v906_v10  ;;  %s1156_s8 = scalar_lea.vmem (!%p192_p9), [#allocation2], %s756_s30  ;;  %s1185_s22 = scalar_lea.sflag (!%p192_p9), [#allocation3], %s216_s26 }
  0x11   : > { %837 = vmatprep.subr.bf16.mxu1 (!%p192_p9), %v907_v11  ;;  %s1004_s15 = smov (!%p192_p9), [#allocation2]  }
  0x12   : > { %s944_s16 = sshll.u32 (!%p192_p9), %s1004_s15, 4  ;;  %s945_s16 = int_to_ptr.vmem [resolvable:$false] %s944_s16 }
  0x13   : > { %818 = vmatpush3.bf16.msra.mxu0 (!%p192_p9), %v897_v1  ;;  %s946_s17 = scalar_lea.vmem (!%p192_p9), %s945_s16, 4096 }
  0x14   : > { %838 = vmatpush3.bf16.msra.mxu1 (!%p192_p9), %v907_v11 }
  0x15   : > { %s1239_s7 = smov (!%p220_p10, %s757_s7), 63 }
  0x16   : > { %s758_s10 = sshll.u32 %s1239_s7, 2 }
  0x17   : > { %s223_s13 = scalar_lea.vmem %s1226_s0, %s758_s10  ;;  %s690_s10 = sshll.u32 %s1156_s8, 4  ;;  %s1178_s10 = int_to_ptr.vmem [resolvable:$true] %s690_s10 }
  0x18   : > { %v898_v2 = vld [vmem:[%s223_s13] sm:$0xff]   ;;  %v899_v3 = vld [vmem:[%s223_s13 + $0x8] sm:$0xff]   ;;  %v900_v4 = vld [vmem:[%s223_s13 + $0x10] sm:$0xff]   ;;  %s940_s14 = scalar_lea.vmem %s1178_s10, 2048  ;;  %p947_p0 = scmp.lt.s32.totalorder %s1178_s10, %s945_s16 }
  0x19   : > { %819 = vmatprep.mubr.msk.bf16.mxu0 %vm306_vm0, %v898_v2  ;;  %v901_v5 = vld [vmem:[%s223_s13 + $0x18] sm:$0xff]   ;;  %v902_v6 = vld [vmem:[%s223_s13 + $0x20] sm:$0xff]   ;;  %v903_v7 = vld [vmem:[%s223_s13 + $0x28] sm:$0xff]   ;;  %p941_p11 = scmp.ne.s32.totalorder %s1178_s10, %s940_s14  ;;  %p948_p1 = scmp.lt.s32.totalorder %s946_s17, %s940_s14 }
  0x1a   : > { %820 = vmatmul.mubr.msk.bf16.vlgmr.msra.gmra.mrb[0].mxu0 %vm306_vm0, %v899_v3  ;;  %v904_v8 = vld [vmem:[%s223_s13 + $0x30] sm:$0xff]   ;;  %v905_v9 = vld [vmem:[%s223_s13 + $0x38] sm:$0xff]   ;;  %s1176_s13 = scalar_lea.hbm %s1231_s5, %s794_s9 }
  0x1b   : > { %823 = vmatprep.mubr.msk.bf16.mxu0 %vm306_vm0, %v900_v4  ;;  %p942_p12 = pnand %p941_p11, %p1075_p5  ;;  %p949_p2 = por %p948_p1, %p947_p0 }
  0x1d   : > { %p943_p13 = pneg %p942_p12 }
  0x1f   : > { %p950_p3 = pnand %p949_p2, %p943_p13 }
  0x22   : > { %824 = vmatmul.mubr.msk.bf16.gmra.mrb[4].mxu0 %vm306_vm0, %v901_v5 }
  0x23   : > { %827 = vmatprep.mubr.msk.bf16.mxu0 %vm306_vm0, %v902_v6 }
  0x2a   : > { %828 = vmatmul.mubr.msk.bf16.gmra.mrb[8].mxu0 %vm306_vm0, %v903_v7 }
  0x2b   : > { %831 = vmatprep.mubr.msk.bf16.mxu0 %vm306_vm0, %v904_v8 }
  0x32   : > { %832 = vmatmul.mubr.msk.bf16.gmra.mrb[12].mxu0 %vm306_vm0, %v905_v9 }
  0xed   : > { %v821_v13 = vpop.f32.mrb[0].mxu0 }
  0xee   : > { %v374_v14 = vadd.f32 %v821_v13, %v1112_v12  ;;  %v365_v15 = vpop.f32.mrb[1].mxu0 }
  0xef   : > { %v366_v16 = vadd.f32 %v1112_v12, %v365_v15  ;;  %v822_v17 = vpop.f32.mrb[2].mxu0 }
  0xf0   : > { %v446_v18 = vmul.f32 0.70710677, %v374_v14  ;;  %v377_v19 = vadd.f32 %v822_v17, %v1112_v12  ;;  %v368_v20 = vpop.f32.mrb[3].mxu0  ;;  %v430_v45 = vmul.f32 0.5, %v374_v14 }
  0xf1   : > { %v444_v21 = vmul.f32 0.70710677, %v366_v16  ;;  %v369_v22 = vadd.f32 %v1112_v12, %v368_v20  ;;  %v428_v59 = vmul.f32 0.5, %v366_v16 }
  0xf2   : > { %908 = verf.f32 %v446_v18  ;;  %v447_v23 = vmul.f32 0.70710677, %v377_v19  ;;  %v431_v46 = vmul.f32 0.5, %v377_v19 }
  0xf3   : > { %910 = verf.f32 %v444_v21  ;;  %v445_v24 = vmul.f32 0.70710677, %v369_v22  ;;  %v429_v60 = vmul.f32 0.5, %v369_v22 }
  0xf4   : > { %912 = verf.f32 %v447_v23 }
  0xf5   : > { %914 = verf.f32 %v445_v24  ;;  %v825_v25 = vpop.f32.mrb[4].mxu0 }
  0xf6   : > { %v390_v26 = vadd.f32 %v825_v25, %v1112_v12  ;;  %v381_v27 = vpop.f32.mrb[5].mxu0 }
  0xf7   : > { %v382_v28 = vadd.f32 %v1112_v12, %v381_v27  ;;  %v826_v29 = vpop.f32.mrb[6].mxu0 }
  0xf8   : > { %v450_v30 = vmul.f32 0.70710677, %v390_v26  ;;  %v393_v31 = vadd.f32 %v826_v29, %v1112_v12  ;;  %v384_v32 = vpop.f32.mrb[7].mxu0  ;;  %v434_v13 = vmul.f32 0.5, %v390_v26 }
  0xf9   : > { %v448_v33 = vmul.f32 0.70710677, %v382_v28  ;;  %v385_v34 = vadd.f32 %v1112_v12, %v384_v32  ;;  %v432_v18 = vmul.f32 0.5, %v382_v28 }
  0xfa   : > { %916 = verf.f32 %v450_v30  ;;  %v451_v35 = vmul.f32 0.70710677, %v393_v31  ;;  %v435_v14 = vmul.f32 0.5, %v393_v31 }
  0xfb   : > { %918 = verf.f32 %v448_v33  ;;  %v449_v36 = vmul.f32 0.70710677, %v385_v34  ;;  %v433_v19 = vmul.f32 0.5, %v385_v34 }
  0xfc   : > { %v909_v37 = vpop.eup %908  ;;  %920 = verf.f32 %v451_v35 }
  0xfd   : > { %v911_v38 = vpop.eup %910  ;;  %v478_v39 = vadd.f32 1.0, %v909_v37  ;;  %922 = verf.f32 %v449_v36  ;;  %v829_v40 = vpop.f32.mrb[8].mxu0 }
  0xfe   : > { %v913_v41 = vpop.eup %912  ;;  %v1123_v42 = vadd.f32 %v829_v40, %v1112_v12  ;;  %v397_v43 = vpop.f32.mrb[9].mxu0  ;;  %v476_v53 = vadd.f32 1.0, %v911_v38 }
  0xff   : > { %v915_v44 = vpop.eup %914  ;;  %v479_v47 = vadd.f32 1.0, %v913_v41  ;;  %v1126_v48 = vadd.f32 %v1112_v12, %v397_v43  ;;  %v830_v49 = vpop.f32.mrb[10].mxu0  ;;  %v494_v55 = vmul.f32 %v478_v39, %v430_v45 }
 0x100   : > { %v454_v50 = vmul.f32 0.70710677, %v1123_v42  ;;  %v1130_v51 = vadd.f32 %v830_v49, %v1112_v12  ;;  %v400_v52 = vpop.f32.mrb[11].mxu0  ;;  %v477_v54 = vadd.f32 1.0, %v915_v44  ;;  %v492_v1 = vmul.f32 %v476_v53, %v428_v59 }
 0x101   : > { %v495_v56 = vmul.f32 %v479_v47, %v431_v46  ;;  %v452_v57 = vmul.f32 0.70710677, %v1126_v48  ;;  %v401_v58 = vadd.f32 %v1112_v12, %v400_v52  ;;  %v438_v40 = vmul.f32 0.5, %v1123_v42 }
 0x102   : > { %924 = verf.f32 %v454_v50  ;;  %v455_v61 = vmul.f32 0.70710677, %v1130_v51  ;;  %v493_v2 = vmul.f32 %v477_v54, %v429_v60  ;;  %v439_v41 = vmul.f32 0.5, %v1130_v51 }
 0x103   : > { %v509_v62 = vpack.c.bf16 %v495_v56, %v494_v55  ;;  %926 = verf.f32 %v452_v57  ;;  %v453_v63 = vmul.f32 0.70710677, %v401_v58  ;;  %v436_v43 = vmul.f32 0.5, %v1126_v48 }
 0x104   : > { %v917_v0 = vpop.eup %916  ;;  %928 = verf.f32 %v455_v61  ;;  %v508_v10 = vpack.c.bf16 %v493_v2, %v492_v1  ;;  %v437_v44 = vmul.f32 0.5, %v401_v58 }
 0x105   : > { %v919_v3 = vpop.eup %918  ;;  %v482_v4 = vadd.f32 1.0, %v917_v0  ;;  %930 = verf.f32 %v453_v63  ;;  %v833_v5 = vpop.f32.mrb[12].mxu0 }
 0x106   : > { %v921_v6 = vpop.eup %920  ;;  %v480_v7 = vadd.f32 1.0, %v919_v3  ;;  %v422_v8 = vadd.f32 %v833_v5, %v1112_v12  ;;  %v413_v9 = vpop.f32.mrb[13].mxu0  ;;  %839 = vmatprep.mubr.msk.bf16.mxu1 %vm306_vm0, %v508_v10  ;;  %v778_v5 = vld [vmem:[%s1230_s4] ss:$0 sm:$0xff] }
 0x107   : > { %v923_v11 = vpop.eup %922  ;;  %v483_v15 = vadd.f32 1.0, %v921_v6  ;;  %v414_v16 = vadd.f32 %v1112_v12, %v413_v9  ;;  %v834_v17 = vpop.f32.mrb[14].mxu0  ;;  %v498_v23 = vmul.f32 %v482_v4, %v434_v13  ;;  %840 = vmatmul.mubr.msk.bf16.vlgmr.msra.gmra.mrb[0].mxu1 %vm306_vm0, %v509_v62 }
 0x108   : > { %v481_v20 = vadd.f32 1.0, %v923_v11  ;;  %v458_v21 = vmul.f32 0.70710677, %v422_v8  ;;  %v416_v22 = vpop.f32.mrb[15].mxu0  ;;  %v425_v27 = vadd.f32 %v834_v17, %v1112_v12  ;;  %v496_v26 = vmul.f32 %v480_v7, %v432_v18 }
 0x109   : > { %v499_v24 = vmul.f32 %v483_v15, %v435_v14  ;;  %v456_v25 = vmul.f32 0.70710677, %v414_v16  ;;  %v417_v30 = vadd.f32 %v1112_v12, %v416_v22  ;;  %v442_v48 = vmul.f32 0.5, %v422_v8 }
 0x10a   : > { %v497_v29 = vmul.f32 %v481_v20, %v433_v19  ;;  %932 = verf.f32 %v458_v21  ;;  %v459_v28 = vmul.f32 0.70710677, %v425_v27  ;;  %v443_v58 = vmul.f32 0.5, %v425_v27 }
 0x10b   : > { %v511_v31 = vpack.c.bf16 %v499_v24, %v498_v23  ;;  %934 = verf.f32 %v456_v25  ;;  %v457_v34 = vmul.f32 0.70710677, %v417_v30  ;;  %v440_v60 = vmul.f32 0.5, %v414_v16 }
 0x10c   : > { %v925_v32 = vpop.eup %924  ;;  %v510_v33 = vpack.c.bf16 %v497_v29, %v496_v26  ;;  %936 = verf.f32 %v459_v28  ;;  %v441_v61 = vmul.f32 0.5, %v417_v30 }
 0x10d   : > { %v927_v35 = vpop.eup %926  ;;  %v486_v36 = vadd.f32 1.0, %v925_v32  ;;  %938 = verf.f32 %v457_v34 }
 0x10e   : > { %v929_v37 = vpop.eup %928  ;;  %v484_v38 = vadd.f32 1.0, %v927_v35  ;;  %843 = vmatprep.mubr.msk.bf16.mxu1 %vm306_vm0, %v510_v33 }
 0x10f   : > { %v931_v39 = vpop.eup %930  ;;  %v487_v12 = vadd.f32 1.0, %v929_v37  ;;  %v502_v46 = vmul.f32 %v486_v36, %v438_v40  ;;  %844 = vmatmul.mubr.msk.bf16.gmra.mrb[4].mxu1 %vm306_vm0, %v511_v31 }
 0x110   : > { %v485_v45 = vadd.f32 1.0, %v931_v39  ;;  %v500_v49 = vmul.f32 %v484_v38, %v436_v43 }
 0x111   : > { %v503_v47 = vmul.f32 %v487_v12, %v439_v41 }
 0x112   : > { %v501_v50 = vmul.f32 %v485_v45, %v437_v44 }
 0x113   : > { %v513_v52 = vpack.c.bf16 %v503_v47, %v502_v46 }
 0x114   : > { %v933_v53 = vpop.eup %932  ;;  %v512_v54 = vpack.c.bf16 %v501_v50, %v500_v49 }
 0x115   : > { %v935_v55 = vpop.eup %934  ;;  %v490_v56 = vadd.f32 1.0, %v933_v53 }
 0x116   : > { %847 = vmatprep.mubr.msk.bf16.mxu1 %vm306_vm0, %v512_v54  ;;  %v937_v42 = vpop.eup %936  ;;  %v488_v51 = vadd.f32 1.0, %v935_v55 }
 0x117   : > { %v939_v57 = vpop.eup %938  ;;  %v491_v59 = vadd.f32 1.0, %v937_v42  ;;  %848 = vmatmul.mubr.msk.bf16.gmra.mrb[8].mxu1 %vm306_vm0, %v513_v52  ;;  %v506_v63 = vmul.f32 %v490_v56, %v442_v48 }
 0x118   : > { %v489_v62 = vadd.f32 1.0, %v939_v57  ;;  %v504_v1 = vmul.f32 %v488_v51, %v440_v60 }
 0x119   : > { %v507_v0 = vmul.f32 %v491_v59, %v443_v58 }
 0x11a   : > { %v505_v2 = vmul.f32 %v489_v62, %v441_v61 }
 0x11b   : > { %v515_v3 = vpack.c.bf16 %v507_v0, %v506_v63 }
 0x11c   : > { %v514_v4 = vpack.c.bf16 %v505_v2, %v504_v1 }
 0x11e   : > { %851 = vmatprep.mubr.msk.bf16.mxu1 %vm306_vm0, %v514_v4 }
 0x11f   : > { %852 = vmatmul.mubr.msk.bf16.gmra.mrb[12].mxu1 %vm306_vm0, %v515_v3 }
 0x1da   : > { %v841_v6 = vpop.f32.mrb[0].mxu1 }
 0x1db   : > { %v606_v7 = vadd.f32 %v841_v6, %v778_v5  ;;  %v597_v8 = vpop.f32.mrb[1].mxu1 }
 0x1dc   : > { %v598_v9 = vadd.f32 %v778_v5, %v597_v8  ;;  %v842_v10 = vpop.f32.mrb[2].mxu1 }
 0x1dd   : > { %662 = vst [vmem:[%s1156_s8 + $0x10] sm:$0xff] %v606_v7  ;;  %v609_v11 = vadd.f32 %v842_v10, %v778_v5  ;;  %v600_v13 = vpop.f32.mrb[3].mxu1 }
 0x1de   : > { %660 = vst [vmem:[%s1156_s8] sm:$0xff] %v598_v9  ;;  %v601_v14 = vadd.f32 %v778_v5, %v600_v13 }
 0x1df   : > { %663 = vst [vmem:[%s1156_s8 + $0x18] sm:$0xff] %v609_v11 }
 0x1e0   : > { %661 = vst [vmem:[%s1156_s8 + $0x8] sm:$0xff] %v601_v14 }
 0x1e2   : > { %v845_v15 = vpop.f32.mrb[4].mxu1 }
 0x1e3   : > { %v622_v16 = vadd.f32 %v845_v15, %v778_v5  ;;  %v613_v17 = vpop.f32.mrb[5].mxu1 }
 0x1e4   : > { %v614_v18 = vadd.f32 %v778_v5, %v613_v17  ;;  %v846_v19 = vpop.f32.mrb[6].mxu1 }
 0x1e5   : > { %666 = vst [vmem:[%s1156_s8 + $0x30] sm:$0xff] %v622_v16  ;;  %v625_v20 = vadd.f32 %v846_v19, %v778_v5  ;;  %v616_v21 = vpop.f32.mrb[7].mxu1 }
 0x1e6   : > { %664 = vst [vmem:[%s1156_s8 + $0x20] sm:$0xff] %v614_v18  ;;  %v617_v22 = vadd.f32 %v778_v5, %v616_v21 }
 0x1e7   : > { %667 = vst [vmem:[%s1156_s8 + $0x38] sm:$0xff] %v625_v20 }
 0x1e8   : > { %665 = vst [vmem:[%s1156_s8 + $0x28] sm:$0xff] %v617_v22 }
 0x1ea   : > { %v849_v23 = vpop.f32.mrb[8].mxu1 }
 0x1eb   : > { %v638_v24 = vadd.f32 %v849_v23, %v778_v5  ;;  %v629_v25 = vpop.f32.mrb[9].mxu1 }
 0x1ec   : > { %v630_v27 = vadd.f32 %v778_v5, %v629_v25  ;;  %v850_v26 = vpop.f32.mrb[10].mxu1 }
 0x1ed   : > { %670 = vst [vmem:[%s1156_s8 + $0x50] sm:$0xff] %v638_v24  ;;  %v641_v29 = vadd.f32 %v850_v26, %v778_v5  ;;  %v632_v30 = vpop.f32.mrb[11].mxu1 }
 0x1ee   : > { %668 = vst [vmem:[%s1156_s8 + $0x40] sm:$0xff] %v630_v27  ;;  %v633_v31 = vadd.f32 %v778_v5, %v632_v30 }
 0x1ef   : > { %671 = vst [vmem:[%s1156_s8 + $0x58] sm:$0xff] %v641_v29 }
 0x1f0   : > { %669 = vst [vmem:[%s1156_s8 + $0x48] sm:$0xff] %v633_v31 }
 0x1f2   : > { %v853_v28 = vpop.f32.mrb[12].mxu1 }
 0x1f3   : > { %v654_v32 = vadd.f32 %v853_v28, %v778_v5  ;;  %v645_v33 = vpop.f32.mrb[13].mxu1 }
 0x1f4   : > { %v646_v34 = vadd.f32 %v778_v5, %v645_v33  ;;  %v854_v35 = vpop.f32.mrb[14].mxu1 }
 0x1f5   : > { %674 = vst [vmem:[%s1156_s8 + $0x70] sm:$0xff] %v654_v32  ;;  %v657_v36 = vadd.f32 %v854_v35, %v778_v5  ;;  %v648_v37 = vpop.f32.mrb[15].mxu1 }
 0x1f6   : > { %672 = vst [vmem:[%s1156_s8 + $0x60] sm:$0xff] %v646_v34  ;;  %v649_v38 = vadd.f32 %v778_v5, %v648_v37 }
 0x1f7   : > { %675 = vst [vmem:[%s1156_s8 + $0x78] sm:$0xff] %v657_v36 }
 0x1f8   : > { %673 = vst [vmem:[%s1156_s8 + $0x68] sm:$0xff] %v649_v38 }
 0x1f9   : > { %953 = shalt.err (!%p950_p3)
}
 0x1fa   : > { %s954_s23 = scalar_lea.hbm %s1176_s13, 2048  ;;  %s958_s30 = scalar_lea.hbm %s1231_s5, 8192 }
 0x1fb   : > { %p955_p4 = scmp.ne.s32.totalorder %s1176_s13, %s954_s23  ;;  %p959_p9 = scmp.lt.u32.totalorder %s1176_s13, %s1231_s5 }
 0x1fc   : > { %p960_p10 = scmp.lt.u32.totalorder %s958_s30, %s954_s23  ;;  %p962_p12 = scmp.lt.u32.totalorder %s954_s23, %s1176_s13 }
 0x1fd   : > { %p956_p7 = pnand %p955_p4, %p1075_p5 }
 0x1fe   : > { %p961_p11 = por %p960_p10, %p959_p9 }
 0x1ff   : > { %p957_p8 = pneg %p956_p7 }
 0x200   : > { %p963_p13 = por %p962_p12, %p961_p11 }
 0x202   : > { %p964_p0 = pnand %p963_p13, %p957_p8 }
 0x204   : > { %967 = shalt.err (!%p964_p0)
}
 0x205   : > { %s1005_s8 = smov 128   ;;  %s1006_s9 = smov 8  }
 0x206   : > { %855 = dma.vmem_to_hbm [thread:$0]  (%p1075_p5), %s1178_s10, 2048, %s1176_s13, %s1185_s22, %s1005_s8, %s1005_s8, %s1006_s9  }
 0x207 PF: > { %p861_p1 = scmp.ge.s32.totalorder %s1002_s21, 2  ;;  %s705_s11 = sand.u32 1, %s990_s18  }
 0x208   : > { %s706_s12 = scalar_lea.sflag [#allocation3], %s705_s11 }
 0x209   : > { %p858_p2 = pnand %p861_p1, %p1079_p6 }
 0x20b   : > { %985 = dma.done.wait (!%p858_p2), %s706_s12, 2048  }
 0x20c   : > { %987 = vsyncadd (!%p858_p2), %s706_s12, 4294965248  ;;  %p15_p3 = scmp.ge.s32.totalorder %s1062_s24, 6   ;;  %s1234_s18 = smov %s994_s19 }
 0x20d   : > { %s1235_s19 = smov %s998_s20  ;;  %s1236_s20 = smov %s1073_s27 }
 0x20e   : > { %s1237_s21 = smov %s1062_s24  ;;  %17 = sbr.rel (!%p15_p3) target bundleno = 3 (0x3), region = 75 }
 0x215   :  { %711 = vsyncpa [#allocation3], 1 }
 0x216   :  { %713 = vsyncpa [#allocation3 + $0x1], 1 }

</bundles_post_ra>
